<compile_context>
chip_gen: v7x
topology: tpu7x:2x2x1
jax: 0.10.0
libtpu: 0.0.40
codegen_flags: <defaults>
</compile_context>

<pallas_src>
import functools

import jax
import jax.numpy as jnp
from jax.experimental import pallas as pl
from jax.experimental.pallas import tpu as pltpu

NUM_INPUTS = 28 * 28      # 784
NUM_OUTPUTS = 10
N_PAD = 128               # lane-dense padded output / weight width


def _round_up(x, m):
    return (x + m - 1) // m * m


def _linear_kernel(x_ref, wt_ref, b_ref, o_ref):
    # f32 activation tile arrives straight from HBM; cast to bf16 in-kernel
    # (VPU op, hidden under the DMA stall), MXU matmul with f32 accumulation,
    # f32 bias add, bf16 full-lane store.
    x_bf16 = x_ref[...].astype(jnp.bfloat16)
    acc = jnp.dot(x_bf16, wt_ref[...], preferred_element_type=jnp.float32)
    o_ref[...] = (acc + b_ref[...]).astype(o_ref.dtype)


def prepare_params(weight, bias):
    """One-time preprocessing of PyTorch-layout parameters (do NOT redo per call).

    weight: (10, 784) f32  ->  (784, 128) bf16  (transposed, zero-padded lanes)
    bias:   (10,)     f32  ->  (1, 128)   f32   (zero-padded lanes)
    """
    wt = jnp.zeros((NUM_INPUTS, N_PAD), jnp.bfloat16)
    wt = wt.at[:, :NUM_OUTPUTS].set(weight.T.astype(jnp.bfloat16))
    b = jnp.zeros((1, N_PAD), jnp.float32)
    b = b.at[:, :NUM_OUTPUTS].set(bias.astype(jnp.float32).reshape(1, -1))
    return wt, b


def _pick_tile(batch, tile_m):
    """Batch tile: large enough to amortize per-step overhead, >=2 grid steps
    when possible (v7x megacore sharding), multiple of 16 for bf16 packing."""
    if batch <= 16:
        # Single block spanning the whole (tiny) batch; block dim == array dim
        # satisfies the (8, 128) layout rule.
        return batch
    return min(tile_m, _round_up(pl.cdiv(batch, 2), 16))


@functools.partial(jax.jit, static_argnames=("tile_m",))
def linear_net_forward(x_nchw, wt_padded, bias_padded, *, tile_m=1024):
    """Forward of LinearNet.

    x_nchw      : (B, C, H, W) float32 with C*H*W == 784
    wt_padded   : (784, 128) bfloat16  from prepare_params()
    bias_padded : (1, 128)   float32   from prepare_params()
    returns     : (B, 10)    float32
    """
    B = x_nchw.shape[0]
    K = NUM_INPUTS

    # Row-major flatten (identical to torch .view); contiguous input so this
    # is metadata-only -- no HBM traffic, no dtype cast here.
    x2d = x_nchw.reshape(B, K)

    tm = _pick_tile(B, tile_m)
    grid = (pl.cdiv(B, tm),)   # ragged tail handled by Pallas partial blocks

    flops = 2 * B * K * N_PAD
    bytes_accessed = (B * K * 4          # f32 activations in
                      + K * N_PAD * 2    # bf16 weight
                      + N_PAD * 4        # f32 bias
                      + B * N_PAD * 2)   # bf16 lane-padded output

    out = pl.pallas_call(
        _linear_kernel,
        out_shape=jax.ShapeDtypeStruct((B, N_PAD), jnp.bfloat16),
        grid_spec=pltpu.PrefetchScalarGridSpec(
            num_scalar_prefetch=0,
            grid=grid,
            in_specs=[
                # x: streamed / double-buffered per batch tile (f32).
                pl.BlockSpec((tm, K), lambda i: (i, 0)),
                # weight / bias: constant block -> VMEM-resident across steps.
                pl.BlockSpec((K, N_PAD), lambda i: (0, 0)),
                pl.BlockSpec((1, N_PAD), lambda i: (0, 0)),
            ],
            out_specs=pl.BlockSpec((tm, N_PAD), lambda i: (i, 0)),
        ),
        compiler_params=pltpu.CompilerParams(
            # Batch tiles are independent -> shard across TCs on v7x megacore.
            dimension_semantics=("parallel",),
        ),
        cost_estimate=pl.CostEstimate(
            flops=flops, transcendentals=0, bytes_accessed=bytes_accessed),
    )(x2d, wt_padded, bias_padded)

    # Drop the 118 zero lanes.  In a fused pipeline the padded bf16 (B, 128)
    # tensor would be returned directly and the consumer (softmax/loss) would
    # fuse this slice; here we materialize (B, 10) f32 to match the module's
    # output contract (tiny: 40 B/row).
    return out[:, :NUM_OUTPUTS].astype(jnp.float32)


def init_params(key):
    # Deterministic init mimicking nn.Linear default: U(-bound, bound),
    # bound = 1/sqrt(fan_in).
    kw, kb = jax.random.split(key)
    bound = 1.0 / jnp.sqrt(jnp.float32(NUM_INPUTS))
    weight = jax.random.uniform(
        kw, (NUM_OUTPUTS, NUM_INPUTS), jnp.float32, -bound, bound)
    bias = jax.random.uniform(
        kb, (NUM_OUTPUTS,), jnp.float32, -bound, bound)
    return weight, bias


if __name__ == "__main__":
    key = jax.random.PRNGKey(0)
    kx, kx2, kp = jax.random.split(key, 3)

    weight, bias = init_params(kp)
    # One-time parameter preprocessing (transpose + lane pad + bf16 cast).
    wt_padded, bias_padded = prepare_params(weight, bias)

    # Small MNIST-like batch: (B=2, C=1, H=28, W=28) -> flattened K=784.
    x = jax.random.normal(kx, (2, 1, 28, 28), jnp.float32)
    out = linear_net_forward(x, wt_padded, bias_padded)
    out = jax.block_until_ready(out)

    ref = x.reshape(x.shape[0], -1) @ weight.T + bias
    assert out.shape == (2, NUM_OUTPUTS)
    assert jnp.allclose(out, ref, atol=5e-2, rtol=5e-2), (
        float(jnp.max(jnp.abs(out - ref))))

    # Second check exercising the multi-step grid + ragged (partial) last
    # block path that replaced jnp.pad: B=40 with tm=32 -> grid=2, tail of 8.
    xb = jax.random.normal(kx2, (40, 1, 28, 28), jnp.float32)
    outb = jax.block_until_ready(linear_net_forward(xb, wt_padded, bias_padded))
    refb = xb.reshape(xb.shape[0], -1) @ weight.T + bias
    assert outb.shape == (40, NUM_OUTPUTS)
    assert jnp.allclose(outb, refb, atol=5e-2, rtol=5e-2), (
        float(jnp.max(jnp.abs(outb - refb))))

    print("KERNEL_OK")
</pallas_src>

<mosaic_0001>
module attributes {stable_mosaic.version = 11 : i64} {
  func.func @_linear_kernel(%arg0: i32, %arg1: memref<2x784xf32, #tpu.memory_space<vmem>>, %arg2: memref<784x128xbf16, #tpu.memory_space<vmem>>, %arg3: memref<1x128xf32, #tpu.memory_space<vmem>>, %arg4: memref<2x128xbf16, #tpu.memory_space<vmem>>) attributes {dimension_semantics = [#tpu.dimension_semantics<parallel>], iteration_bounds = array<i64: 1>, scalar_prefetch = 0 : i64, scratch_operands = 0 : i64, tpu.core_type = #tpu.core_type<tc>, window_params = [{transform_indices = @transform_0, window_bounds = array<i64: 2, 784>}, {pipeline_mode = #tpu.pipeline_mode<synchronous>, transform_indices = @transform_1, window_bounds = array<i64: 784, 128>}, {pipeline_mode = #tpu.pipeline_mode<synchronous>, transform_indices = @transform_2, window_bounds = array<i64: 1, 128>}, {transform_indices = @transform_3, window_bounds = array<i64: 2, 128>}]} {
    %c0 = arith.constant 0 : index
    %c0_0 = arith.constant 0 : index
    %0 = vector.load %arg1[%c0, %c0_0] : memref<2x784xf32, #tpu.memory_space<vmem>>, vector<2x784xf32>
    %1 = arith.truncf %0 : vector<2x784xf32> to vector<2x784xbf16>
    %c0_1 = arith.constant 0 : index
    %c0_2 = arith.constant 0 : index
    %2 = vector.load %arg2[%c0_1, %c0_2] : memref<784x128xbf16, #tpu.memory_space<vmem>>, vector<784x128xbf16>
    %cst = arith.constant dense<0.000000e+00> : vector<2x128xf32>
    %3 = tpu.matmul %1, %2, %cst {dimension_numbers = #tpu.dot_dimension_numbers<[1], [0], [0], [1], [0, 0, 1, 1], [], []>} : vector<2x784xbf16>, vector<784x128xbf16>, vector<2x128xf32> -> vector<2x128xf32>
    %c0_3 = arith.constant 0 : index
    %c0_4 = arith.constant 0 : index
    %4 = vector.load %arg3[%c0_3, %c0_4] : memref<1x128xf32, #tpu.memory_space<vmem>>, vector<1x128xf32>
    %5 = vector.broadcast %4 : vector<1x128xf32> to vector<2x128xf32>
    %6 = arith.addf %3, %5 : vector<2x128xf32>
    %7 = arith.truncf %6 : vector<2x128xf32> to vector<2x128xbf16>
    %c0_5 = arith.constant 0 : index
    %c0_6 = arith.constant 0 : index
    %8 = vector.load %arg4[%c0_5, %c0_6] : memref<2x128xbf16, #tpu.memory_space<vmem>>, vector<2x128xbf16>
    tpu.vector_store %arg4[%c0_5, %c0_6], %7 {strides = array<i32>} : memref<2x128xbf16, #tpu.memory_space<vmem>>, vector<2x128xbf16>,
    return
  }
  func.func @transform_0(%arg0: i32) -> (i32, i32) {
    %c0_i32 = arith.constant 0 : i32
    %c0_i32_0 = arith.constant 0 : i32
    return %arg0, %c0_i32 : i32, i32
  }
  func.func @transform_1(%arg0: i32) -> (i32, i32) {
    %c0_i32 = arith.constant 0 : i32
    %c0_i32_0 = arith.constant 0 : i32
    %c0_i32_1 = arith.constant 0 : i32
    return %c0_i32, %c0_i32_0 : i32, i32
  }
  func.func @transform_2(%arg0: i32) -> (i32, i32) {
    %c0_i32 = arith.constant 0 : i32
    %c0_i32_0 = arith.constant 0 : i32
    %c0_i32_1 = arith.constant 0 : i32
    return %c0_i32, %c0_i32_0 : i32, i32
  }
  func.func @transform_3(%arg0: i32) -> (i32, i32) {
    %c0_i32 = arith.constant 0 : i32
    %c0_i32_0 = arith.constant 0 : i32
    return %arg0, %c0_i32 : i32, i32
  }
}

</mosaic_0001>

<bundles_post_ra>
// kernel: linear_net_forward.1
= control target key start
LH: loop header
LB: loop body
LE: loop exit
PB: predicated region body
PF: predicated region fallthrough
CT: control target
= control target key end

     0   :  { %8 = vsyncpa [#allocation3], 0  ;;  %s856_s12 = smov [#allocation2]   ;;  %s906_s0 = inlined_call_operand.vmem [shape: f32[2,784], index: 0, kind: input, shape index: {}]   ;;  %s907_s1 = inlined_call_operand.hbm [shape: bf16[784,128], index: 1, kind: input, shape index: {}]   ;;  %s908_s2 = inlined_call_operand.vmem [shape: f32[1,128], index: 2, kind: input, shape index: {}]   ;;  %s909_s3 = inlined_call_operand.vmem [shape: bf16[2,128], index: 3, kind: output, shape index: {}]  }
   0x1   :  { %s16_s13 = sshll.u32 %s856_s12, 4  ;;  %s832_s16 = scalar_lea.hbm %s907_s1, 6272  ;;  %s17_s13 = int_to_ptr.vmem [resolvable:$true] %s16_s13 }
   0x2   :  { %p833_p0 = scmp.ne.s32.totalorder %s907_s1, %s832_s16  ;;  %p836_p1 = scmp.lt.u32.totalorder %s832_s16, %s907_s1 }
   0x4   :  { %p838_p2 = pnand %p836_p1, %p833_p0 }
   0x6   :  { %841 = shalt.err (!%p838_p2)
}
   0x7   :  { %s842_s21 = scalar_lea.vmem %s17_s13, 6272  ;;  %p847_p4 = scmp.lt.s32.totalorder %s17_s13, %s17_s13 }
   0x8   :  { %p843_p3 = scmp.ne.s32.totalorder %s17_s13, %s842_s21  ;;  %p848_p5 = scmp.lt.s32.totalorder %s842_s21, %s842_s21 }
   0xa   :  { %p849_p6 = por %p848_p5, %p847_p4 }
   0xc   :  { %p850_p7 = pnand %p849_p6, %p843_p3 }
   0xe   :  { %853 = shalt.err (!%p850_p7)
}
   0xf   :  { %s857_s22 = smov 64   ;;  %s858_s23 = smov 4  }
  0x10   :  { %22 = dma.hbm_to_vmem [thread:$0]  %s907_s1, 6272, %s17_s13, [#allocation3], %s857_s22, %s857_s22, %s858_s23  }
  0x11   :  { %854 = dma.done.wait [#allocation3], 6272  }
  0x12   :  { %855 = vsyncadd [#allocation3], 4294961024  ;;  %v781_v0 = vld [vmem:[#allocation2 + $0x40] sm:$0xff]   ;;  %v785_v4 = vld [vmem:[#allocation2 + $0x48] sm:$0xff]   ;;  %v859_v21 = vmov 1983009808   ;;  %v37_v23 = vlaneseq }
  0x13   :  { %v782_v1 = vld [vmem:[#allocation2] sm:$0xff]   ;;  %701 = vmatprep.subr.bf16.mxu0 %v781_v0  ;;  %v786_v5 = vld [vmem:[#allocation2 + $0x8] sm:$0xff]   ;;  %v789_v8 = vld [vmem:[#allocation2 + $0x50] sm:$0xff]   ;;  %v35_v22 = vunpack.c.l.s4 %v859_v21  ;;  %v860_v45 = vmov 0.0   ;;  %vm861_vm0 = vmmov 0   ;;  %vm479_vm1 = vcmask 130048  }
  0x14   :  { %v783_v2 = vld [vmem:[#allocation2 + $0xc0] sm:$0xff]   ;;  %702 = vmatpush3.bf16.msra.mxu0 %v782_v1  ;;  %v787_v6 = vld [vmem:[#allocation2 + $0xc8] sm:$0xff]   ;;  %v790_v9 = vld [vmem:[#allocation2 + $0x10] sm:$0xff]   ;;  %v38_v29 = vshrl.u32 %v37_v23, 7 }
  0x15   :  { %v784_v3 = vld [vmem:[#allocation2 + $0x80] sm:$0xff]   ;;  %723 = vmatprep.subr.bf16.mxu1 %v783_v2  ;;  %703 = vmatprep.subr.bf16.mxu0 %v785_v4  ;;  %v788_v7 = vld [vmem:[#allocation2 + $0x88] sm:$0xff]   ;;  %v791_v10 = vld [vmem:[#allocation2 + $0xd0] sm:$0xff]   ;;  %v36_v28 = vunpack.c.0.s8 %v35_v22 }
  0x16   :  { %724 = vmatpush3.bf16.msra.mxu1 %v784_v3  ;;  %v792_v11 = vld [vmem:[#allocation2 + $0x90] sm:$0xff]   ;;  %v793_v12 = vld [vmem:[#allocation2 + $0x58] sm:$0xff]   ;;  %v797_v16 = vld [vmem:[#allocation2 + $0x60] sm:$0xff]  }
  0x17   :  { %725 = vmatprep.subr.bf16.mxu1 %v787_v6  ;;  %v794_v13 = vld [vmem:[#allocation2 + $0x18] sm:$0xff]   ;;  %v798_v17 = vld [vmem:[#allocation2 + $0x20] sm:$0xff]   ;;  %v801_v20 = vld [vmem:[#allocation2 + $0x68] sm:$0xff]   ;;  %v39_v34 = vsub.s32 %v36_v28, %v38_v29 }
  0x18   :  { %704 = vmatpush3.bf16.msra.mxu0 %v786_v5  ;;  %v795_v14 = vld [vmem:[#allocation2 + $0xd8] sm:$0xff]   ;;  %v799_v18 = vld [vmem:[#allocation2 + $0xe0] sm:$0xff]   ;;  %v802_v24 = vld [vmem:[#allocation2 + $0x28] sm:$0xff]  }
  0x19   :  { %705 = vmatprep.subr.bf16.mxu0 %v789_v8  ;;  %v796_v15 = vld [vmem:[#allocation2 + $0x98] sm:$0xff]   ;;  %v800_v19 = vld [vmem:[#allocation2 + $0xa0] sm:$0xff]   ;;  %v803_v25 = vld [vmem:[#allocation2 + $0xe8] sm:$0xff]  }
  0x1a   :  { %726 = vmatpush3.bf16.msra.mxu1 %v788_v7  ;;  %v804_v26 = vld [vmem:[#allocation2 + $0xa8] sm:$0xff]   ;;  %v805_v27 = vld [vmem:[#allocation2 + $0x70] sm:$0xff]   ;;  %v809_v33 = vld [vmem:[#allocation2 + $0x78] sm:$0xff]  }
  0x1b   :  { %727 = vmatprep.subr.bf16.mxu1 %v791_v10  ;;  %v806_v30 = vld [vmem:[#allocation2 + $0x30] sm:$0xff]   ;;  %v810_v35 = vld [vmem:[#allocation2 + $0x38] sm:$0xff]   ;;  %v29_v37 = vld [vmem:[%s906_s0] sm:$0xff] }
  0x1c   :  { %706 = vmatpush3.bf16.msra.mxu0 %v790_v9  ;;  %v807_v31 = vld [vmem:[#allocation2 + $0xf0] sm:$0xff]   ;;  %v811_v36 = vld [vmem:[#allocation2 + $0xf8] sm:$0xff]   ;;  %v40_v38 = vrot.slane %v29_v37, %v39_v34  ;;  %v33_v40 = vcombine.high %v29_v37, %v29_v37  ;;  %v813_v41 = vld [vmem:[#allocation2 + $0x140] sm:$0xff]  }
  0x1d   :  { %707 = vmatprep.subr.bf16.mxu0 %v793_v12  ;;  %v808_v32 = vld [vmem:[#allocation2 + $0xb0] sm:$0xff]   ;;  %v812_v39 = vld [vmem:[#allocation2 + $0xb8] sm:$0xff]   ;;  %v815_v48 = vld [vmem:[#allocation2 + $0x100] sm:$0xff]  }
  0x1e   :  { %728 = vmatpush3.bf16.msra.mxu1 %v792_v11  ;;  %v48_v42 = vcombine.high %v40_v38, %v40_v38  ;;  %v47_v43 = vrot.slane %v33_v40, %v39_v34  ;;  %v73_v44 = vpack.c.bf16 %v40_v38, %v40_v38  ;;  %v816_v50 = vld [vmem:[#allocation2 + $0x148] sm:$0xff]   ;;  %v818_v53 = vld [vmem:[#allocation2 + $0x150] sm:$0xff]   ;;  %v820_v55 = vld [vmem:[#allocation2 + $0x158] sm:$0xff]  }
  0x1f   :  { %729 = vmatprep.subr.bf16.mxu1 %v795_v14  ;;  %v817_v52 = vld [vmem:[#allocation2 + $0x108] sm:$0xff]   ;;  %v819_v54 = vld [vmem:[#allocation2 + $0x110] sm:$0xff]   ;;  %v821_v56 = vld [vmem:[#allocation2 + $0x118] sm:$0xff]  }
  0x20   :  { %708 = vmatpush3.bf16.msra.mxu0 %v794_v13  ;;  %v74_v46 = vpack.c.bf16 %v48_v42, %v48_v42  ;;  %v49_v47 = vcombine.high %v47_v43, %v47_v43  ;;  %v75_v49 = vpack.c.bf16 %v47_v43, %v47_v43  ;;  %v822_v57 = vld [vmem:[#allocation2 + $0x160] sm:$0xff]   ;;  %v30_v59 = vld [vmem:[%s906_s0 + $0x8] sm:$0x3f]  ;;  %v826_v5 = vld [vmem:[#allocation2 + $0x170] sm:$0xff]  }
  0x21   :  { %709 = vmatprep.subr.bf16.mxu0 %v797_v16  ;;  %v830_v58 = vld [vmem:[#allocation2 + $0x180] sm:$0xff]   ;;  %v50_v60 = vcombine.high %v30_v59, %v30_v59  ;;  %v57_v61 = vrot.slane %v30_v59, %v39_v34  ;;  %v824_v1 = vld [vmem:[#allocation2 + $0x168] sm:$0xff]   ;;  %v827_v6 = vld [vmem:[#allocation2 + $0x130] sm:$0xff]  }
  0x22   :  { %730 = vmatpush3.bf16.msra.mxu1 %v796_v15  ;;  %515 = vmatprep.mubr.bf16.mxu0 %v74_v46  ;;  %v76_v51 = vpack.c.bf16 %v49_v47, %v49_v47  ;;  %v823_v62 = vld [vmem:[#allocation2 + $0x120] sm:$0xff]   ;;  %v825_v4 = vld [vmem:[#allocation2 + $0x128] sm:$0xff]   ;;  %v828_v7 = vld [vmem:[#allocation2 + $0x178] sm:$0xff]  }
  0x23   :  { %731 = vmatprep.subr.bf16.mxu1 %v799_v18  ;;  %v64_v63 = vrot.slane %v50_v60, %v39_v34  ;;  %v65_v0 = vcombine.high %v57_v61, %v57_v61  ;;  %v829_v8 = vld [vmem:[#allocation2 + $0x138] sm:$0xff]   ;;  %v77_v9 = vpack.c.bf16 %v57_v61, %v57_v61  ;;  %v650_v11 = vld [vmem:[%s908_s2] ss:$0 sm:$0xff] }
  0x24   :  { %710 = vmatpush3.bf16.msra.mxu0 %v798_v17  ;;  %555 = vmatprep.mubr.bf16.mxu1 %v76_v51 }
  0x25   :  { %711 = vmatprep.subr.bf16.mxu0 %v801_v20  ;;  %v78_v2 = vpack.c.bf16 %v65_v0, %v65_v0  ;;  %v79_v3 = vpack.c.bf16 %v64_v63, %v64_v63 }
  0x26   :  { %732 = vmatpush3.bf16.msra.mxu1 %v800_v19 }
  0x27   :  { %733 = vmatprep.subr.bf16.mxu1 %v803_v25 }
  0x28   :  { %712 = vmatpush3.bf16.msra.mxu0 %v802_v24 }
  0x29   :  { %713 = vmatprep.subr.bf16.mxu0 %v805_v27 }
  0x2a   :  { %734 = vmatpush3.bf16.msra.mxu1 %v804_v26 }
  0x2b   :  { %735 = vmatprep.subr.bf16.mxu1 %v807_v31 }
  0x2c   :  { %714 = vmatpush3.bf16.msra.mxu0 %v806_v30 }
  0x2d   :  { %715 = vmatprep.subr.bf16.mxu0 %v809_v33 }
  0x2e   :  { %736 = vmatpush3.bf16.msra.mxu1 %v808_v32 }
  0x2f   :  { %737 = vmatprep.subr.bf16.mxu1 %v811_v36 }
  0x30   :  { %716 = vmatpush3.bf16.msra.mxu0 %v810_v35 }
  0x31   :  { %745 = vmatprep.subr.bf16.mxu0 %v813_v41 }
  0x32   :  { %738 = vmatpush3.bf16.msra.mxu1 %v812_v39 }
  0x33   :  { %769 = vmatprep.subr.bf16.mxu1 %v860_v45  ;;  %516 = vmatmul.mubr.bf16.vlgmr.msra.gmra.mrb[0].mxu0 %v73_v44 }
  0x34   :  { %746 = vmatpush3.bf16.msra.mxu0 %v815_v48  ;;  %595 = vmatprep.mubr.bf16.mxu0 %v78_v2 }
  0x35   :  { %556 = vmatmul.mubr.bf16.vlgmr.msra.gmra.mrb[0].mxu1 %v75_v49  ;;  %747 = vmatprep.subr.bf16.mxu0 %v816_v50 }
  0x36   :  { %771 = vmatprep.mubr.msk.bf16.mxu1 %vm861_vm0, %v860_v45  ;;  %770 = vmatpush3.bf16.msra.mxu1 %v830_v58 }
  0x38   :  { %748 = vmatpush3.bf16.msra.mxu0 %v817_v52 }
  0x39   :  { %749 = vmatprep.subr.bf16.mxu0 %v818_v53 }
  0x3c   :  { %750 = vmatpush3.bf16.msra.mxu0 %v819_v54 }
  0x3d   :  { %751 = vmatprep.subr.bf16.mxu0 %v820_v55  ;;  %772 = vmatmul.mubr.msk.bf16.vlgmr.msra.gmra.mrb[4].mxu1 %vm479_vm1, %v79_v3 }
  0x40   :  { %752 = vmatpush3.bf16.msra.mxu0 %v821_v56 }
  0x41   :  { %753 = vmatprep.subr.bf16.mxu0 %v822_v57 }
  0x44   :  { %754 = vmatpush3.bf16.msra.mxu0 %v823_v62 }
  0x45   :  { %755 = vmatprep.subr.bf16.mxu0 %v824_v1 }
  0x48   :  { %756 = vmatpush3.bf16.msra.mxu0 %v825_v4 }
  0x49   :  { %757 = vmatprep.subr.bf16.mxu0 %v826_v5 }
  0x4c   :  { %758 = vmatpush3.bf16.msra.mxu0 %v827_v6 }
  0x4d   :  { %759 = vmatprep.subr.bf16.mxu0 %v828_v7 }
  0x50   :  { %760 = vmatpush3.bf16.msra.mxu0 %v829_v8 }
  0x53   :  { %596 = vmatmul.mubr.bf16.vlgmr.msra.gmra.mrb[4].mxu0 %v77_v9 }
 0x106   :  { %v717_v10 = vpop.f32.mrb[0].mxu0 }
 0x107   :  { %v718_v12 = vpop.f32.mrb[1].mxu0 }
 0x108   :  { %v719_v13 = vadd.f32 %v718_v12, %v717_v10  ;;  %v720_v14 = vpop.f32.mrb[2].mxu0  ;;  %v739_v15 = vpop.f32.mrb[0].mxu1 }
 0x109   :  { %v721_v16 = vpop.f32.mrb[3].mxu0  ;;  %v740_v17 = vpop.f32.mrb[1].mxu1 }
 0x10a   :  { %v518_v18 = vadd.f32 %v719_v13, %v650_v11  ;;  %v741_v19 = vadd.f32 %v740_v17, %v739_v15  ;;  %v742_v20 = vpop.f32.mrb[2].mxu1 }
 0x10b   :  { %v743_v21 = vpop.f32.mrb[3].mxu1 }
 0x10c   :  { %v558_v22 = vadd.f32 %v741_v19, %v518_v18 }
 0x110   :  { %v637_v23 = vpop.f32.mrb[4].mxu1 }
 0x111   :  { %v773_v24 = vpop.f32.mrb[5].mxu1 }
 0x112   :  { %v640_v25 = vpop.f32.mrb[6].mxu1 }
 0x113   :  { %v774_v26 = vpop.f32.mrb[7].mxu1 }
 0x126   :  { %v761_v27 = vpop.f32.mrb[4].mxu0 }
 0x127   :  { %v762_v28 = vpop.f32.mrb[5].mxu0 }
 0x128   :  { %v763_v29 = vadd.f32 %v762_v28, %v761_v27  ;;  %v764_v30 = vpop.f32.mrb[6].mxu0 }
 0x129   :  { %v765_v31 = vpop.f32.mrb[7].mxu0 }
 0x12a   :  { %v598_v32 = vadd.f32 %v763_v29, %v558_v22 }
 0x12c   :  { %v638_v33 = vadd.f32 %v637_v23, %v598_v32 }
 0x12e   :  { %v643_v34 = vpack.c.bf16 %v638_v33, %v638_v33 }
 0x130   :  { %644 = vst [vmem:[%s909_s3] sm:$0x1] %v643_v34 }
 0x131   :  { %649 = vsyncpa [#allocation3], 1 }

</bundles_post_ra>
